<compile_context>
chip_gen: v7x
topology: tpu7x:2x2x1
jax: 0.10.0
libtpu: 0.0.40
codegen_flags: <defaults>
</compile_context>

<pallas_src>
import jax
import jax.numpy as jnp
from jax import lax
from jax.experimental import pallas as pl
from jax.experimental.pallas import tpu as pltpu


# ---------------------------------------------------------------------------
# Tunables
# ---------------------------------------------------------------------------
_ONEHOT_MAX_VOCAB = 2048              # one-hot MXU gather only when V <= this
_ONEHOT_BYTES_BUDGET = 4 << 20        # cap on the (T, V) one-hot intermediate
_DMA_WINDOW = 32                      # in-flight row DMAs on the HBM-table path
_MAX_TOKENS_PER_HBM_CALL = 1 << 15    # keeps scalar-prefetch ids within SMEM


def _round_up(x, m):
    return ((x + m - 1) // m) * m


def _vmem_capacity_bytes():
    # Generation-aware VMEM budget (128 MiB on v5e/v6e, 64 MiB on v7x).
    try:
        info = pltpu.get_tpu_info()
        return int(getattr(info, "vmem_capacity_bytes", 64 << 20))
    except Exception:
        return 64 << 20  # conservative fallback (v7x per-TensorCore VMEM)


def _tokens_per_block(n_tokens, emb_dim, itemsize, vmem_cap, vocab=None):
    """Pick T so the (T, D) output block is ~1-2 MiB (multiple of 8 rows)."""
    target = (2 << 20) if vmem_cap >= (96 << 20) else (1 << 20)
    t = max(8, (target // (emb_dim * itemsize)) // 8 * 8)
    if vocab is not None:
        # Bound the (T, V) one-hot intermediate (lane-padded V, f32 compare).
        t = min(t, max(8, (_ONEHOT_BYTES_BUDGET // (max(vocab, 128) * 4)) // 8 * 8))
    t = min(t, _round_up(max(n_tokens, 1), 8))
    return max(8, t)


# ---------------------------------------------------------------------------
# Kernel A: VMEM-resident table, one-hot MXU gather (small vocab).
# ---------------------------------------------------------------------------
def _onehot_gather_kernel(ids_ref, table_ref, out_ref):
    # ids_ref   : (T, 1) int32 token ids for this block (VMEM, pipelined)
    # table_ref : (V, D) embedding table, VMEM-resident (constant block index)
    # out_ref   : (T, D) output block
    tokens = out_ref.shape[0]
    vocab = table_ref.shape[0]
    ids = ids_ref[...]                                          # (T, 1)
    cols = lax.broadcasted_iota(jnp.int32, (tokens, vocab), 1)  # (T, V)
    onehot = (cols == ids).astype(table_ref.dtype)              # exact 0/1
    out_ref[...] = jnp.dot(
        onehot, table_ref[...], preferred_element_type=jnp.float32
    ).astype(out_ref.dtype)


# ---------------------------------------------------------------------------
# Kernel B: table stays in HBM; rolling-window row DMAs straight into out_ref.
# ---------------------------------------------------------------------------
def _hbm_row_dma_kernel(ids_ref, table_ref, out_ref, sems):
    # ids_ref   : (n_pad,) int32 in SMEM (scalar prefetch)
    # table_ref : (V, D) embedding table left in HBM (memory_space=pl.ANY)
    # out_ref   : (T, D) output block (VMEM) -- gathered rows are DMA'd in place
    # sems      : (_DMA_WINDOW,) DMA semaphores -> up to W row copies in flight
    tokens = out_ref.shape[0]
    n_ids = ids_ref.shape[0]
    window = min(_DMA_WINDOW, tokens)
    base = pl.program_id(0) * tokens

    def start_row(row, t, slot):
        pltpu.make_async_copy(
            table_ref.at[pl.ds(row, 1), :],
            out_ref.at[pl.ds(t, 1), :],
            sems.at[slot],
        ).start()

    def wait_row(t, slot):
        pltpu.make_async_copy(
            table_ref.at[pl.ds(0, 1), :],
            out_ref.at[pl.ds(t, 1), :],
            sems.at[slot],
        ).wait()

    # Prime the DMA window (static unroll, at most _DMA_WINDOW starts).
    for t in range(window):
        start_row(ids_ref[base + t], t, t)

    # Steady state: hoist the scalar id for the *next* DMA above the wait
    # (a .wait() breaks SMEM sst->sld forwarding), then wait, then issue.
    @pl.loop(0, tokens)
    def _(t):
        slot = lax.rem(t, window)
        nxt = t + window
        nxt_row = ids_ref[jnp.minimum(base + nxt, n_ids - 1)]
        wait_row(t, slot)

        @pl.when(nxt < tokens)
        def _():
            start_row(nxt_row, nxt, slot)


# ---------------------------------------------------------------------------
# Per-path pallas_call wrappers
# ---------------------------------------------------------------------------
def _vmem_onehot_call(flat_ids, table, vmem_cap):
    vocab, emb_dim = table.shape
    itemsize = table.dtype.itemsize
    n = flat_ids.shape[0]
    tpb = _tokens_per_block(n, emb_dim, itemsize, vmem_cap, vocab=vocab)
    n_pad = _round_up(n, tpb)
    if n_pad != n:
        flat_ids = jnp.pad(flat_ids, (0, n_pad - n))   # pad with row 0 (valid)
    ids_2d = flat_ids.reshape(n_pad, 1)

    table_bytes = vocab * emb_dim * itemsize
    out_block = tpb * emb_dim * itemsize
    ids_block = tpb * 128 * 4                          # lane-padded int32 block
    onehot_bytes = tpb * _round_up(vocab, 128) * 4
    needed = (table_bytes                               # Buffered(1): held once
              + 2 * out_block + 2 * ids_block           # double-buffered tiles
              + onehot_bytes + (4 << 20))               # temporaries + headroom
    vmem_limit = int(min(max(needed, 16 << 20),
                         max(vmem_cap - (8 << 20), 16 << 20)))

    grid_spec = pltpu.PrefetchScalarGridSpec(
        num_scalar_prefetch=0,
        grid=(n_pad // tpb,),
        in_specs=[
            pl.BlockSpec((tpb, 1), lambda i: (i, 0)),
            pl.BlockSpec((vocab, emb_dim), lambda i: (0, 0),
                         pipeline_mode=pl.Buffered(1)),
        ],
        out_specs=pl.BlockSpec((tpb, emb_dim), lambda i: (i, 0)),
    )
    out = pl.pallas_call(
        _onehot_gather_kernel,
        out_shape=jax.ShapeDtypeStruct((n_pad, emb_dim), table.dtype),
        grid_spec=grid_spec,
        compiler_params=pltpu.CompilerParams(
            dimension_semantics=("parallel",),
            vmem_limit_bytes=vmem_limit,
        ),
    )(ids_2d, table)
    return out[:n]


def _hbm_dma_call(flat_ids, table, vmem_cap):
    vocab, emb_dim = table.shape
    itemsize = table.dtype.itemsize
    n = flat_ids.shape[0]
    tpb = _tokens_per_block(n, emb_dim, itemsize, vmem_cap)
    n_pad = _round_up(n, tpb)
    if n_pad != n:
        flat_ids = jnp.pad(flat_ids, (0, n_pad - n))

    out_block = tpb * emb_dim * itemsize
    vmem_limit = int(min(max(2 * out_block + (4 << 20), 16 << 20),
                         max(vmem_cap - (8 << 20), 16 << 20)))

    grid_spec = pltpu.PrefetchScalarGridSpec(
        num_scalar_prefetch=1,
        grid=(n_pad // tpb,),
        in_specs=[pl.BlockSpec(memory_space=pl.ANY)],
        out_specs=pl.BlockSpec((tpb, emb_dim), lambda i, ids: (i, 0)),
        scratch_shapes=[pltpu.SemaphoreType.DMA((_DMA_WINDOW,))],
    )
    out = pl.pallas_call(
        _hbm_row_dma_kernel,
        out_shape=jax.ShapeDtypeStruct((n_pad, emb_dim), table.dtype),
        grid_spec=grid_spec,
        compiler_params=pltpu.CompilerParams(
            dimension_semantics=("parallel",),
            vmem_limit_bytes=vmem_limit,
        ),
    )(flat_ids, table)
    return out[:n]


# ---------------------------------------------------------------------------
# Public wrapper: embedding_table[input_ids] -> input_ids.shape + (D,)
# ---------------------------------------------------------------------------
def random_init_embedding_forward(input_ids, embedding_table, *,
                                  force_hbm_table=False):
    vocab, emb_dim = embedding_table.shape
    itemsize = embedding_table.dtype.itemsize
    lead_shape = input_ids.shape

    n_tokens = 1
    for s in lead_shape:
        n_tokens *= int(s)
    if n_tokens == 0:
        return jnp.zeros(lead_shape + (emb_dim,), embedding_table.dtype)

    flat_ids = input_ids.reshape(-1).astype(jnp.int32)

    vmem_cap = _vmem_capacity_bytes()
    table_bytes = vocab * emb_dim * itemsize
    table_budget = min(vmem_cap // 3, 40 << 20)   # 40 MiB on v5e/v6e, ~21 MiB on v7x
    use_onehot = ((not force_hbm_table)
                  and vocab <= _ONEHOT_MAX_VOCAB
                  and table_bytes <= table_budget)

    if use_onehot:
        flat_out = _vmem_onehot_call(flat_ids, embedding_table, vmem_cap)
    else:
        # TODO(synk): for mid-size vocabs that still fit VMEM, an in-VMEM
        # jnp.take / vocab-tiled one-hot streaming path would beat per-row
        # DMAs; kept on the row-DMA path here for lowering robustness.
        chunks = []
        for s in range(0, n_tokens, _MAX_TOKENS_PER_HBM_CALL):
            chunks.append(_hbm_dma_call(
                flat_ids[s:s + _MAX_TOKENS_PER_HBM_CALL],
                embedding_table, vmem_cap))
        flat_out = chunks[0] if len(chunks) == 1 else jnp.concatenate(chunks, 0)

    return flat_out.reshape(lead_shape + (emb_dim,))


if __name__ == "__main__":
    # Shapes implied by the module: nn.Embedding(vocab_size, embedding_dim)
    # applied to integer token ids of shape (batch, seq).
    vocab_size = 64
    embedding_dim = 128
    batch, seq = 2, 8

    key = jax.random.PRNGKey(0)
    k_ids, k_emb = jax.random.split(key)

    # Deterministic parameter init: nn.Embedding default is N(0, 1).
    embedding_table = jax.random.normal(
        k_emb, (vocab_size, embedding_dim), dtype=jnp.float32)
    input_ids = jax.random.randint(
        k_ids, (batch, seq), minval=0, maxval=vocab_size, dtype=jnp.int32)

    ref = jnp.take(embedding_table, input_ids, axis=0)

    # Path A (default here): VMEM-resident table + one-hot MXU gather.
    out_vmem = jax.block_until_ready(
        random_init_embedding_forward(input_ids, embedding_table))
    assert out_vmem.shape == (batch, seq, embedding_dim)
    assert out_vmem.dtype == jnp.float32
    assert jnp.allclose(out_vmem, ref)

    # Path B: HBM table + rolling-window row DMAs straight into out_ref
    # (large-vocab path), exercised at small shapes for correctness coverage.
    out_hbm = jax.block_until_ready(
        random_init_embedding_forward(input_ids, embedding_table,
                                      force_hbm_table=True))
    assert jnp.array_equal(out_hbm, ref)

    print("KERNEL_OK")
</pallas_src>

<mosaic_0001>
module attributes {stable_mosaic.version = 11 : i64} {
  func.func @_onehot_gather_kernel(%arg0: i32, %arg1: memref<16x1xi32, #tpu.memory_space<vmem>>, %arg2: memref<64x128xf32, #tpu.memory_space<vmem>>, %arg3: memref<16x128xf32, #tpu.memory_space<vmem>>) attributes {dimension_semantics = [#tpu.dimension_semantics<parallel>], iteration_bounds = array<i64: 1>, scalar_prefetch = 0 : i64, scratch_operands = 0 : i64, tpu.core_type = #tpu.core_type<tc>, window_params = [{transform_indices = @transform_0, window_bounds = array<i64: 16, 1>}, {pipeline_mode = #tpu.pipeline_mode<synchronous>, transform_indices = @transform_1, window_bounds = array<i64: 64, 128>}, {transform_indices = @transform_2, window_bounds = array<i64: 16, 128>}]} {
    %c0 = arith.constant 0 : index
    %c0_0 = arith.constant 0 : index
    %0 = vector.load %arg1[%c0, %c0_0] : memref<16x1xi32, #tpu.memory_space<vmem>>, vector<16x1xi32>
    %1 = tpu.iota {dimensions = array<i32: 1>} : vector<16x64xi32>
    %2 = vector.broadcast %0 : vector<16x1xi32> to vector<16x64xi32>
    %3 = arith.cmpi eq, %1, %2 : vector<16x64xi32>
    %4 = arith.extui %3 : vector<16x64xi1> to vector<16x64xi32>
    %5 = arith.sitofp %4 : vector<16x64xi32> to vector<16x64xf32>
    %c0_1 = arith.constant 0 : index
    %c0_2 = arith.constant 0 : index
    %6 = vector.load %arg2[%c0_1, %c0_2] : memref<64x128xf32, #tpu.memory_space<vmem>>, vector<64x128xf32>
    %cst = arith.constant dense<0.000000e+00> : vector<16x128xf32>
    %7 = tpu.matmul %5, %6, %cst {dimension_numbers = #tpu.dot_dimension_numbers<[1], [0], [0], [1], [0, 0, 1, 1], [], []>} : vector<16x64xf32>, vector<64x128xf32>, vector<16x128xf32> -> vector<16x128xf32>
    %c0_3 = arith.constant 0 : index
    %c0_4 = arith.constant 0 : index
    %8 = vector.load %arg3[%c0_3, %c0_4] : memref<16x128xf32, #tpu.memory_space<vmem>>, vector<16x128xf32>
    tpu.vector_store %arg3[%c0_3, %c0_4], %7 {strides = array<i32>} : memref<16x128xf32, #tpu.memory_space<vmem>>, vector<16x128xf32>,
    return
  }
  func.func @transform_0(%arg0: i32) -> (i32, i32) {
    %c0_i32 = arith.constant 0 : i32
    %c0_i32_0 = arith.constant 0 : i32
    return %arg0, %c0_i32 : i32, i32
  }
  func.func @transform_1(%arg0: i32) -> (i32, i32) {
    %c0_i32 = arith.constant 0 : i32
    %c0_i32_0 = arith.constant 0 : i32
    %c0_i32_1 = arith.constant 0 : i32
    return %c0_i32, %c0_i32_0 : i32, i32
  }
  func.func @transform_2(%arg0: i32) -> (i32, i32) {
    %c0_i32 = arith.constant 0 : i32
    %c0_i32_0 = arith.constant 0 : i32
    return %arg0, %c0_i32 : i32, i32
  }
}

</mosaic_0001>

<bundles_post_ra>
// kernel: tpu_custom_call.1
= control target key start
LH: loop header
LB: loop body
LE: loop exit
PB: predicated region body
PF: predicated region fallthrough
CT: control target
= control target key end

     0   :  { %7 = vsyncpa [#allocation3], 0  ;;  %s312_s0 = inlined_call_operand.vmem [shape: s32[16,1], index: 0, kind: input, shape index: {}]   ;;  %s313_s1 = inlined_call_operand.hbm [shape: f32[64,128], index: 1, kind: input, shape index: {}]   ;;  %s314_s2 = inlined_call_operand.hbm [shape: f32[16,128], index: 2, kind: output, shape index: {}]  }
   0x1   :  { %8 = vsyncpa [#allocation4], 0  ;;  %s255_s9 = smov [#allocation2]   ;;  %s207_s13 = scalar_lea.hbm %s313_s1, 1024 }
   0x2   :  { %s16_s10 = sshll.u32 %s255_s9, 4  ;;  %p208_p0 = scmp.ne.s32.totalorder %s313_s1, %s207_s13  ;;  %s17_s10 = int_to_ptr.vmem [resolvable:$true] %s16_s10 }
   0x3   :  { %p211_p1 = scmp.lt.u32.totalorder %s207_s13, %s313_s1 }
   0x5   :  { %p213_p2 = pnand %p211_p1, %p208_p0 }
   0x7   :  { %216 = shalt.err (!%p213_p2)
}
   0x8   :  { %s217_s18 = scalar_lea.vmem %s17_s10, 1024  ;;  %p222_p4 = scmp.lt.s32.totalorder %s17_s10, %s17_s10 }
   0x9   :  { %p218_p3 = scmp.ne.s32.totalorder %s17_s10, %s217_s18  ;;  %p223_p5 = scmp.lt.s32.totalorder %s217_s18, %s217_s18 }
   0xb   :  { %p224_p6 = por %p223_p5, %p222_p4 }
   0xd   :  { %p225_p7 = pnand %p224_p6, %p218_p3 }
   0xf   :  { %228 = shalt.err (!%p225_p7)
}
  0x10   :  { %s256_s19 = smov 128   ;;  %s257_s20 = smov 8  }
  0x11   :  { %22 = dma.hbm_to_vmem [thread:$0]  %s313_s1, 1024, %s17_s10, [#allocation3], %s256_s19, %s256_s19, %s257_s20  }
  0x12   :  { %251 = dma.done.wait [#allocation3], 1024  }
  0x13   :  { %252 = vsyncadd [#allocation3], 4294966272  ;;  %v258_v0 = vmov 0   ;;  %v26_v1 = vld [vmem:[%s312_s0] sm:$0xff]  ;;  %v43_v3 = vld [vmem:[#allocation2 + $0x8] sm:$0xff]  ;;  %v28_v15 = vlaneseq  ;;  %vm50_vm0 = vcmask 523264  }
  0x14   :  { %206 = vset.pattern.permute.xlu0 %v258_v0  ;;  %v42_v2 = vld [vmem:[#allocation2] sm:$0xff]  ;;  %v44_v4 = vld [vmem:[#allocation2 + $0x10] sm:$0xff]  ;;  %v45_v5 = vld [vmem:[#allocation2 + $0x18] sm:$0xff]  ;;  %v259_v18 = vmov 0.0  }
  0x15   :  { %31 = vperm.xlu0 %206, %v26_v1   ;;  %v27_v6 = vld [vmem:[%s312_s0 + $0x8] sm:$0xff]  ;;  %v184_v7 = vpack.c.bf16 %v43_v3, %v42_v2  ;;  %v188_v8 = vpack.c.bf16 %v45_v5, %v44_v4  ;;  %v46_v9 = vld [vmem:[#allocation2 + $0x20] sm:$0xff]  ;;  %v48_v12 = vld [vmem:[#allocation2 + $0x30] sm:$0xff]  ;;  %v29_v16 = vand.u32 127, %v28_v15  ;;  %s260_s0 = smov [#allocation5]  }
  0x16   :  { %v47_v10 = vld [vmem:[#allocation2 + $0x28] sm:$0xff]  ;;  %v49_v13 = vld [vmem:[#allocation2 + $0x38] sm:$0xff]  ;;  %s139_s1 = sshll.u32 %s260_s0, 4  ;;  %s140_s1 = int_to_ptr.vmem [resolvable:$true] %s139_s1 }
  0x17   :  { %185 = vmatprep.subr.bf16.mxu0 %v184_v7  ;;  %v192_v11 = vpack.c.bf16 %v47_v10, %v46_v9  ;;  %v196_v14 = vpack.c.bf16 %v49_v13, %v48_v12  ;;  %s229_s27 = scalar_lea.vmem %s140_s1, 256  ;;  %p234_p9 = scmp.lt.s32.totalorder %s140_s1, %s140_s1 }
  0x18   :  { %187 = vmatpush3.bf16.msra.mxu0 %v184_v7  ;;  %p230_p8 = scmp.ne.s32.totalorder %s140_s1, %s229_s27  ;;  %p235_p10 = scmp.lt.s32.totalorder %s229_s27, %s229_s27 }
  0x19   :  { %34 = vperm.xlu0 %206, %v27_v6   ;;  %189 = vmatprep.subr.bf16.mxu0 %v188_v8 }
  0x1a   :  { %p236_p11 = por %p235_p10, %p234_p9 }
  0x1c   :  { %191 = vmatpush3.bf16.msra.mxu0 %v188_v8  ;;  %p237_p12 = pnand %p236_p11, %p230_p8 }
  0x1d   :  { %193 = vmatprep.subr.bf16.mxu0 %v192_v11 }
  0x20   :  { %195 = vmatpush3.bf16.msra.mxu0 %v192_v11 }
  0x21   :  { %197 = vmatprep.subr.bf16.mxu0 %v196_v14 }
  0x24   :  { %199 = vmatpush3.bf16.msra.mxu0 %v196_v14 }
  0x94   :  { %v32_v17 = vpop.permute.xlu0 %31 }
  0x95   :  { %vm36_vm1 = vcmp.eq.s32.totalorder %v29_v16, %v32_v17 }
  0x96   :  { %v151_v19 = vsel %vm36_vm1, 1.0, %v259_v18 }
  0x97   :  { %181 = vmatprep.mubr.msk.f32.mxu0 %vm50_vm0, %v151_v19 }
  0x98   :  { %v35_v20 = vpop.permute.xlu0 %34 }
  0x99   :  { %vm37_vm2 = vcmp.eq.s32.totalorder %v29_v16, %v35_v20 }
  0x9a   :  { %v152_v21 = vsel %vm37_vm2, 1.0, %v259_v18 }
  0x9b   :  { %182 = vmatmul.mubr.msk.f32.vlgmr.msra.gmra.mrb[0].mxu0 %vm50_vm0, %v152_v21 }
 0x16e   :  { %v183_v22 = vpop.f32.mrb[0].mxu0 }
 0x16f   :  { %133 = vst [vmem:[#allocation5 + $0x8] sm:$0xff] %v183_v22  ;;  %v123_v23 = vpop.f32.mrb[1].mxu0 }
 0x170   :  { %132 = vst [vmem:[#allocation5] sm:$0xff] %v123_v23 }
 0x171   :  { %240 = shalt.err (!%p237_p12)
}
 0x172   :  { %s241_s30 = scalar_lea.hbm %s314_s2, 256 }
 0x173   :  { %p242_p13 = scmp.ne.s32.totalorder %s314_s2, %s241_s30  ;;  %p245_p0 = scmp.lt.u32.totalorder %s241_s30, %s314_s2 }
 0x175   :  { %p247_p1 = pnand %p245_p0, %p242_p13 }
 0x177   :  { %250 = shalt.err (!%p247_p1)
}
 0x178   :  { %145 = dma.vmem_to_hbm [thread:$0]  %s140_s1, 256, %s314_s2, [#allocation4], %s256_s19, %s256_s19, %s257_s20  }
 0x179   :  { %253 = dma.done.wait [#allocation4], 256  }
 0x17a   :  { %254 = vsyncadd [#allocation4], 4294967040 }
 0x17b   :  { %149 = vsyncpa [#allocation3], 1 }
 0x17c   :  { %150 = vsyncpa [#allocation4], 1 }

</bundles_post_ra>
